<compile_context>
chip_gen: v7x
topology: tpu7x:2x2x1
jax: 0.10.0
libtpu: 0.0.40
codegen_flags: <defaults>
</compile_context>

<pallas_src>
import functools

import jax
import jax.numpy as jnp
from jax.experimental import pallas as pl
from jax.experimental.pallas import tpu as pltpu


def _round_up(x: int, m: int) -> int:
    return ((x + m - 1) // m) * m


def _vmem_capacity_bytes() -> int:
    try:
        return int(pltpu.get_tpu_info().vmem_capacity_bytes)
    except Exception:
        return 64 * 1024 * 1024  # conservative: v7x per-TensorCore VMEM


def _single_buffer_spec(block_shape, index_map):
    """BlockSpec for an operand whose block never changes across the grid:
    keep a single VMEM buffer instead of the default double buffer."""
    try:
        return pl.BlockSpec(block_shape, index_map, pipeline_mode=pl.Buffered(1))
    except TypeError:  # very old jax without pipeline_mode: fall back quietly
        return pl.BlockSpec(block_shape, index_map)


# --------------------------- kernels ---------------------------------------

def _mlp_resident_kernel(x_ref, w1_ref, b1_ref, w2_ref, b2_ref, o_ref):
    # Cast activations to the weight dtype (bf16 by default) so both matmuls
    # run at the MXU's native bf16 rate; accumulate in f32.
    x = x_ref[...].astype(w1_ref.dtype)
    h = jnp.dot(x, w1_ref[...], preferred_element_type=jnp.float32)
    h = jnp.maximum(h + b1_ref[...], 0.0)                 # bias + ReLU in f32
    out = jnp.dot(h.astype(w2_ref.dtype), w2_ref[...],
                  preferred_element_type=jnp.float32)
    o_ref[...] = (out + b2_ref[...]).astype(o_ref.dtype)


def _mlp_ktiled_kernel(x_ref, w1_ref, b1_ref, w2_ref, b2_ref, o_ref, acc_ref):
    # Hidden dim tiled across grid axis 1; f32 accumulator kept in VMEM.
    k = pl.program_id(1)

    @pl.when(k == 0)
    def _():
        acc_ref[...] = jnp.zeros_like(acc_ref)

    x = x_ref[...].astype(w1_ref.dtype)
    h = jnp.dot(x, w1_ref[...], preferred_element_type=jnp.float32)
    h = jnp.maximum(h + b1_ref[...], 0.0)
    acc_ref[...] += jnp.dot(h.astype(w2_ref.dtype), w2_ref[...],
                            preferred_element_type=jnp.float32)

    @pl.when(k == pl.num_programs(1) - 1)
    def _():
        o_ref[...] = (acc_ref[...] + b2_ref[...]).astype(o_ref.dtype)


# --------------------------- wrappers ---------------------------------------

def prepare_params(w1, b1, w2, b2, *, param_dtype=jnp.bfloat16):
    """Pad feature dims to lane-aligned sizes and cast weights ONCE.

    Hoisted out of the per-call forward path so the full weight matrices are
    not re-streamed through HBM on every call.  Biases stay f32.
    """
    in_f, hid = w1.shape
    out_f = w2.shape[1]

    in_p = _round_up(in_f, 128)
    hid_p = _round_up(hid, 128)
    # v6e/v7x MXUs are 256 wide in N: use 256-multiples for wide output heads.
    out_p = _round_up(out_f, 256) if out_f > 128 else _round_up(out_f, 128)

    w1 = w1.astype(param_dtype)
    w2 = w2.astype(param_dtype)
    b1 = b1.astype(jnp.float32)
    b2 = b2.astype(jnp.float32)

    if (in_p, hid_p) != (in_f, hid):
        w1 = jnp.zeros((in_p, hid_p), param_dtype).at[:in_f, :hid].set(w1)
    if hid_p != hid:
        b1 = jnp.zeros((hid_p,), jnp.float32).at[:hid].set(b1)
    if (hid_p, out_p) != (hid, out_f):
        w2 = jnp.zeros((hid_p, out_p), param_dtype).at[:hid, :out_f].set(w2)
    if out_p != out_f:
        b2 = jnp.zeros((out_p,), jnp.float32).at[:out_f].set(b2)

    return w1, b1.reshape(1, hid_p), w2, b2.reshape(1, out_p)


@functools.partial(
    jax.jit,
    static_argnames=("out_features", "block_batch", "hidden_block",
                     "force_k_tiled", "allow_jnp_fallback"))
def net_forward_prepared(x, w1p, b1p, w2p, b2p, *, out_features,
                         block_batch=512, hidden_block=512,
                         force_k_tiled=False, allow_jnp_fallback=False):
    """x: (batch, ...features) -> (batch, out_features); params from prepare_params."""
    batch = x.shape[0]
    x2d = x.reshape(batch, -1)                  # torch .view(-1, nfeat)
    in_f = x2d.shape[1]
    in_p, hid_p = w1p.shape
    out_p = w2p.shape[1]
    out_f = out_features
    out_dtype = x2d.dtype
    assert in_f <= in_p, "flattened features exceed prepared W1 rows"

    x_item = jnp.dtype(x2d.dtype).itemsize
    w_item = jnp.dtype(w1p.dtype).itemsize
    o_item = jnp.dtype(out_dtype).itemsize

    # --- degenerate tiny problems: pallas launch overhead can never win ----
    if allow_jnp_fallback and 2 * batch * (in_f * hid_p + hid_p * out_p) < (1 << 22):
        h = jnp.maximum(
            jnp.dot(x2d.astype(w1p.dtype), w1p[:in_f],
                    preferred_element_type=jnp.float32) + b1p, 0.0)
        out = jnp.dot(h.astype(w2p.dtype), w2p,
                      preferred_element_type=jnp.float32) + b2p
        return out[:, :out_f].astype(out_dtype)

    # --- batch tile: at most one 8-row remainder of padding ----------------
    batch8 = _round_up(batch, 8)
    if batch8 <= block_batch:
        tb = batch8
    else:
        nb = -(-batch8 // block_batch)
        tb = _round_up(-(-batch8 // nb), 8)
    batch_p = _round_up(batch8, tb)
    n_batch = batch_p // tb

    # --- pad x only when actually needed (static shape checks) -------------
    if batch_p != batch or in_p != in_f:
        xp = jnp.zeros((batch_p, in_p), x2d.dtype).at[:batch, :in_f].set(x2d)
    else:
        xp = x2d

    cost = pl.CostEstimate(
        flops=2 * batch_p * (in_p * hid_p + hid_p * out_p),
        transcendentals=0,
        bytes_accessed=(batch_p * in_p * x_item
                        + (in_p * hid_p + hid_p * out_p) * w_item
                        + (hid_p + out_p) * 4
                        + batch_p * out_p * o_item))

    vmem_cap = _vmem_capacity_bytes()
    weight_bytes = (in_p * hid_p + hid_p * out_p) * w_item + (hid_p + out_p) * 4
    resident_bytes = weight_bytes + 2 * tb * in_p * x_item + 2 * tb * out_p * o_item
    use_resident = (not force_k_tiled) and resident_bytes <= int(0.7 * vmem_cap)

    if use_resident:
        vmem_limit = min(vmem_cap,
                         max(16 << 20, resident_bytes * 5 // 4 + (2 << 20)))
        out_padded = pl.pallas_call(
            _mlp_resident_kernel,
            out_shape=jax.ShapeDtypeStruct((batch_p, out_p), out_dtype),
            grid=(n_batch,),
            in_specs=[
                pl.BlockSpec((tb, in_p), lambda i: (i, 0)),       # x (pipelined)
                _single_buffer_spec((in_p, hid_p), lambda i: (0, 0)),  # W1
                _single_buffer_spec((1, hid_p), lambda i: (0, 0)),     # b1
                _single_buffer_spec((hid_p, out_p), lambda i: (0, 0)), # W2
                _single_buffer_spec((1, out_p), lambda i: (0, 0)),     # b2
            ],
            out_specs=pl.BlockSpec((tb, out_p), lambda i: (i, 0)),
            compiler_params=pltpu.CompilerParams(
                dimension_semantics=("parallel",),
                vmem_limit_bytes=int(vmem_limit)),
            cost_estimate=cost,
        )(xp, w1p, b1p, w2p, b2p)
    else:
        # K-tiled fallback: hidden dim split across a reduction grid axis so
        # the weight working set fits v7x's 64 MiB per-TensorCore VMEM.
        units = hid_p // 128
        d = max(1, min(hidden_block // 128, units))
        while units % d:
            d -= 1
        tk = 128 * d
        n_k = hid_p // tk

        tiled_bytes = (2 * tb * in_p * x_item
                       + 2 * (in_p * tk + tk * out_p) * w_item
                       + 2 * (tk + out_p) * 4
                       + 2 * tb * out_p * o_item
                       + tb * out_p * 4)                     # f32 accumulator
        vmem_limit = min(vmem_cap,
                         max(16 << 20, tiled_bytes * 5 // 4 + (2 << 20)))

        out_padded = pl.pallas_call(
            _mlp_ktiled_kernel,
            out_shape=jax.ShapeDtypeStruct((batch_p, out_p), out_dtype),
            grid=(n_batch, n_k),
            in_specs=[
                pl.BlockSpec((tb, in_p), lambda i, k: (i, 0)),   # x (per batch tile)
                pl.BlockSpec((in_p, tk), lambda i, k: (0, k)),   # W1 hidden tile
                pl.BlockSpec((1, tk), lambda i, k: (0, k)),      # b1 hidden tile
                pl.BlockSpec((tk, out_p), lambda i, k: (k, 0)),  # W2 hidden tile
                _single_buffer_spec((1, out_p), lambda i, k: (0, 0)),  # b2
            ],
            out_specs=pl.BlockSpec((tb, out_p), lambda i, k: (i, 0)),
            scratch_shapes=[pltpu.VMEM((tb, out_p), jnp.float32)],
            compiler_params=pltpu.CompilerParams(
                dimension_semantics=("parallel", "arbitrary"),
                vmem_limit_bytes=int(vmem_limit)),
            cost_estimate=cost,
        )(xp, w1p, b1p, w2p, b2p)

    if batch_p == batch and out_p == out_f:
        return out_padded
    return out_padded[:batch, :out_f]


def net_forward(x, w1, b1, w2, b2, *, param_dtype=jnp.bfloat16, **kwargs):
    """One-shot convenience (pads/casts params per call).  For repeated calls,
    hoist prepare_params() out of the loop instead."""
    prepped = prepare_params(w1, b1, w2, b2, param_dtype=param_dtype)
    return net_forward_prepared(x, *prepped, out_features=w2.shape[1], **kwargs)


def reference_forward(x, w1, b1, w2, b2):
    x2d = x.reshape(x.shape[0], -1)
    h = jnp.maximum(x2d @ w1 + b1, 0.0)
    return h @ w2 + b2


# --------------------------- demo / tests ------------------------------------

if __name__ == "__main__":
    key = jax.random.PRNGKey(0)

    def init_params(k, in_f, hid, out_f):
        kw1, kb1, kw2, kb2 = jax.random.split(k, 4)
        lim1 = 1.0 / jnp.sqrt(in_f)
        lim2 = 1.0 / jnp.sqrt(hid)
        w1 = jax.random.uniform(kw1, (in_f, hid), jnp.float32, -lim1, lim1)
        b1 = jax.random.uniform(kb1, (hid,), jnp.float32, -lim1, lim1)
        w2 = jax.random.uniform(kw2, (hid, out_f), jnp.float32, -lim2, lim2)
        b2 = jax.random.uniform(kb2, (out_f,), jnp.float32, -lim2, lim2)
        return w1, b1, w2, b2

    # ---- Test 1: f32 params, resident-weight kernel, tight tolerance -------
    # x is 4-D to exercise the .view(-1, num_flat_features) flattening:
    # batch=8, features = 2*4*4 = 32, hidden=64, out=16.
    batch, in_f, hid, out_f = 8, 32, 64, 16
    kx, kp = jax.random.split(key)
    x = jax.random.normal(kx, (batch, 2, 4, 4), dtype=jnp.float32)
    w1, b1, w2, b2 = init_params(kp, in_f, hid, out_f)
    ref = reference_forward(x, w1, b1, w2, b2)

    prep_f32 = prepare_params(w1, b1, w2, b2, param_dtype=jnp.float32)
    out = net_forward_prepared(x, *prep_f32, out_features=out_f)
    jax.block_until_ready(out)
    assert out.shape == (batch, out_f)
    assert jnp.allclose(out, ref, atol=1e-5, rtol=1e-5), "f32 resident mismatch"

    # ---- Test 2: bf16 params (default, MXU-native), looser tolerance -------
    prep_bf16 = prepare_params(w1, b1, w2, b2)      # bf16 weights, f32 biases
    out16 = net_forward_prepared(x, *prep_bf16, out_features=out_f)
    jax.block_until_ready(out16)
    assert out16.shape == (batch, out_f)
    assert jnp.allclose(out16, ref, atol=5e-2, rtol=5e-2), "bf16 resident mismatch"

    # ---- Test 3: K-tiled accumulator path (v7x large-weight fallback) ------
    batch3, in3, hid3, out3 = 300, 32, 200, 16
    kx3, kp3 = jax.random.split(kp)
    x3 = jax.random.normal(kx3, (batch3, in3), dtype=jnp.float32)
    p3 = init_params(kp3, in3, hid3, out3)
    prep3 = prepare_params(*p3, param_dtype=jnp.float32)
    out3v = net_forward_prepared(x3, *prep3, out_features=out3,
                                 hidden_block=128, force_k_tiled=True)
    jax.block_until_ready(out3v)
    ref3 = reference_forward(x3, *p3)
    assert out3v.shape == (batch3, out3)
    assert jnp.allclose(out3v, ref3, atol=1e-4, rtol=1e-4), "k-tiled mismatch"

    print("KERNEL_OK")
</pallas_src>

<mosaic_0001>
module attributes {stable_mosaic.version = 11 : i64} {
  func.func @_mlp_resident_kernel(%arg0: i32, %arg1: memref<8x128xf32, #tpu.memory_space<vmem>>, %arg2: memref<128x128xf32, #tpu.memory_space<vmem>>, %arg3: memref<1x128xf32, #tpu.memory_space<vmem>>, %arg4: memref<128x128xf32, #tpu.memory_space<vmem>>, %arg5: memref<1x128xf32, #tpu.memory_space<vmem>>, %arg6: memref<8x128xf32, #tpu.memory_space<vmem>>) attributes {dimension_semantics = [#tpu.dimension_semantics<parallel>], iteration_bounds = array<i64: 1>, scalar_prefetch = 0 : i64, scratch_operands = 0 : i64, tpu.core_type = #tpu.core_type<tc>, window_params = [{transform_indices = @transform_0, window_bounds = array<i64: 8, 128>}, {pipeline_mode = #tpu.pipeline_mode<synchronous>, transform_indices = @transform_1, window_bounds = array<i64: 128, 128>}, {pipeline_mode = #tpu.pipeline_mode<synchronous>, transform_indices = @transform_2, window_bounds = array<i64: 1, 128>}, {pipeline_mode = #tpu.pipeline_mode<synchronous>, transform_indices = @transform_3, window_bounds = array<i64: 128, 128>}, {pipeline_mode = #tpu.pipeline_mode<synchronous>, transform_indices = @transform_4, window_bounds = array<i64: 1, 128>}, {transform_indices = @transform_5, window_bounds = array<i64: 8, 128>}]} {
    %c0 = arith.constant 0 : index
    %c0_0 = arith.constant 0 : index
    %0 = vector.load %arg1[%c0, %c0_0] : memref<8x128xf32, #tpu.memory_space<vmem>>, vector<8x128xf32>
    %c0_1 = arith.constant 0 : index
    %c0_2 = arith.constant 0 : index
    %1 = vector.load %arg2[%c0_1, %c0_2] : memref<128x128xf32, #tpu.memory_space<vmem>>, vector<128x128xf32>
    %cst = arith.constant dense<0.000000e+00> : vector<8x128xf32>
    %2 = tpu.matmul %0, %1, %cst {dimension_numbers = #tpu.dot_dimension_numbers<[1], [0], [0], [1], [0, 0, 1, 1], [], []>} : vector<8x128xf32>, vector<128x128xf32>, vector<8x128xf32> -> vector<8x128xf32>
    %c0_3 = arith.constant 0 : index
    %c0_4 = arith.constant 0 : index
    %3 = vector.load %arg3[%c0_3, %c0_4] : memref<1x128xf32, #tpu.memory_space<vmem>>, vector<1x128xf32>
    %4 = vector.broadcast %3 : vector<1x128xf32> to vector<8x128xf32>
    %5 = arith.addf %2, %4 : vector<8x128xf32>
    %cst_5 = arith.constant 0.000000e+00 : f32
    %6 = vector.broadcast %cst_5 : f32 to vector<8x128xf32>
    %7 = arith.maximumf %5, %6 : vector<8x128xf32>
    %c0_6 = arith.constant 0 : index
    %c0_7 = arith.constant 0 : index
    %8 = vector.load %arg4[%c0_6, %c0_7] : memref<128x128xf32, #tpu.memory_space<vmem>>, vector<128x128xf32>
    %cst_8 = arith.constant dense<0.000000e+00> : vector<8x128xf32>
    %9 = tpu.matmul %7, %8, %cst_8 {dimension_numbers = #tpu.dot_dimension_numbers<[1], [0], [0], [1], [0, 0, 1, 1], [], []>} : vector<8x128xf32>, vector<128x128xf32>, vector<8x128xf32> -> vector<8x128xf32>
    %c0_9 = arith.constant 0 : index
    %c0_10 = arith.constant 0 : index
    %10 = vector.load %arg5[%c0_9, %c0_10] : memref<1x128xf32, #tpu.memory_space<vmem>>, vector<1x128xf32>
    %11 = vector.broadcast %10 : vector<1x128xf32> to vector<8x128xf32>
    %12 = arith.addf %9, %11 : vector<8x128xf32>
    %c0_11 = arith.constant 0 : index
    %c0_12 = arith.constant 0 : index
    %13 = vector.load %arg6[%c0_11, %c0_12] : memref<8x128xf32, #tpu.memory_space<vmem>>, vector<8x128xf32>
    tpu.vector_store %arg6[%c0_11, %c0_12], %12 {strides = array<i32>} : memref<8x128xf32, #tpu.memory_space<vmem>>, vector<8x128xf32>,
    return
  }
  func.func @transform_0(%arg0: i32) -> (i32, i32) {
    %c0_i32 = arith.constant 0 : i32
    %c0_i32_0 = arith.constant 0 : i32
    return %arg0, %c0_i32 : i32, i32
  }
  func.func @transform_1(%arg0: i32) -> (i32, i32) {
    %c0_i32 = arith.constant 0 : i32
    %c0_i32_0 = arith.constant 0 : i32
    %c0_i32_1 = arith.constant 0 : i32
    return %c0_i32, %c0_i32_0 : i32, i32
  }
  func.func @transform_2(%arg0: i32) -> (i32, i32) {
    %c0_i32 = arith.constant 0 : i32
    %c0_i32_0 = arith.constant 0 : i32
    %c0_i32_1 = arith.constant 0 : i32
    return %c0_i32, %c0_i32_0 : i32, i32
  }
  func.func @transform_3(%arg0: i32) -> (i32, i32) {
    %c0_i32 = arith.constant 0 : i32
    %c0_i32_0 = arith.constant 0 : i32
    %c0_i32_1 = arith.constant 0 : i32
    return %c0_i32, %c0_i32_0 : i32, i32
  }
  func.func @transform_4(%arg0: i32) -> (i32, i32) {
    %c0_i32 = arith.constant 0 : i32
    %c0_i32_0 = arith.constant 0 : i32
    %c0_i32_1 = arith.constant 0 : i32
    return %c0_i32, %c0_i32_0 : i32, i32
  }
  func.func @transform_5(%arg0: i32) -> (i32, i32) {
    %c0_i32 = arith.constant 0 : i32
    %c0_i32_0 = arith.constant 0 : i32
    return %arg0, %c0_i32 : i32, i32
  }
}

</mosaic_0001>

<bundles_post_ra>
// kernel: net_forward_prepared.1
= control target key start
LH: loop header
LB: loop body
LE: loop exit
PB: predicated region body
PF: predicated region fallthrough
CT: control target
= control target key end

     0   :  { %10 = vsyncpa [#allocation3], 0  ;;  %s582_s0 = inlined_call_operand.vmem [shape: f32[8,128], index: 0, kind: input, shape index: {}]   ;;  %s583_s1 = inlined_call_operand.vmem [shape: f32[128,128], index: 1, kind: input, shape index: {}]   ;;  %s584_s2 = inlined_call_operand.vmem [shape: f32[1,128], index: 2, kind: input, shape index: {}]   ;;  %s585_s3 = inlined_call_operand.hbm [shape: f32[128,128], index: 3, kind: input, shape index: {}]   ;;  %s586_s4 = inlined_call_operand.vmem [shape: f32[1,128], index: 4, kind: input, shape index: {}]   ;;  %s587_s5 = inlined_call_operand.hbm [shape: f32[8,128], index: 5, kind: output, shape index: {}]  }
   0x1   :  { %11 = vsyncpa [#allocation4], 0  ;;  %s448_s18 = smov [#allocation2]   ;;  %s400_s22 = scalar_lea.hbm %s585_s3, 2048 }
   0x2   :  { %s23_s19 = sshll.u32 %s448_s18, 4  ;;  %p401_p0 = scmp.ne.s32.totalorder %s585_s3, %s400_s22  ;;  %s24_s19 = int_to_ptr.vmem [resolvable:$true] %s23_s19 }
   0x3   :  { %p404_p1 = scmp.lt.u32.totalorder %s400_s22, %s585_s3 }
   0x5   :  { %p406_p2 = pnand %p404_p1, %p401_p0 }
   0x7   :  { %409 = shalt.err (!%p406_p2)
}
   0x8   :  { %s410_s27 = scalar_lea.vmem %s24_s19, 2048  ;;  %p415_p4 = scmp.lt.s32.totalorder %s24_s19, %s24_s19 }
   0x9   :  { %p411_p3 = scmp.ne.s32.totalorder %s24_s19, %s410_s27  ;;  %p416_p5 = scmp.lt.s32.totalorder %s410_s27, %s410_s27 }
   0xb   :  { %p417_p6 = por %p416_p5, %p415_p4 }
   0xd   :  { %p418_p7 = pnand %p417_p6, %p411_p3 }
   0xf   :  { %421 = shalt.err (!%p418_p7)
}
  0x10   :  { %s449_s28 = smov 128   ;;  %s450_s29 = smov 8  }
  0x11   :  { %29 = dma.hbm_to_vmem [thread:$0]  %s585_s3, 2048, %s24_s19, [#allocation3], %s449_s28, %s449_s28, %s450_s29  }
  0x12   :  { %444 = dma.done.wait [#allocation3], 2048  }
  0x13   :  { %445 = vsyncadd [#allocation3], 4294965248  ;;  %v451_v0 = vmov 0.0|0.0   ;;  %vm452_vm0 = vmmov 0   ;;  %v453_v1 = vmov 0.0   ;;  %v36_v2 = vld [vmem:[%s583_s1] sm:$0xff] }
  0x14   :  { %345 = vmatprep.subr.bf16.mxu0 %v451_v0  ;;  %307 = vmatprep.mubr.msk.f32.mxu0 %vm452_vm0, %v453_v1  ;;  %v37_v3 = vld [vmem:[%s583_s1 + $0x8] sm:$0xff]  ;;  %v38_v4 = vld [vmem:[%s583_s1 + $0x10] sm:$0xff]  ;;  %v39_v6 = vld [vmem:[%s583_s1 + $0x18] sm:$0xff] }
  0x15   :  { %369 = vmatprep.subr.bf16.mxu1 %v451_v0  ;;  %342 = vmatprep.mubr.msk.f32.mxu1 %vm452_vm0, %v453_v1  ;;  %v346_v5 = vpack.c.bf16 %v37_v3, %v36_v2  ;;  %v349_v7 = vpack.c.bf16 %v39_v6, %v38_v4  ;;  %v40_v8 = vld [vmem:[%s583_s1 + $0x20] sm:$0xff]  ;;  %v41_v9 = vld [vmem:[%s583_s1 + $0x28] sm:$0xff]  ;;  %v132_v12 = vld [vmem:[#allocation2 + $0x10] sm:$0xff] }
  0x16   :  { %v130_v10 = vld [vmem:[#allocation2] sm:$0xff]  ;;  %v131_v11 = vld [vmem:[#allocation2 + $0x8] sm:$0xff]  ;;  %v133_v13 = vld [vmem:[#allocation2 + $0x18] sm:$0xff]  ;;  %v352_v14 = vpack.c.bf16 %v41_v9, %v40_v8 }
  0x17   :  { %347 = vmatpush3.bf16.msra.mxu0 %v346_v5  ;;  %v370_v15 = vpack.c.bf16 %v131_v11, %v130_v10  ;;  %v42_v16 = vld [vmem:[%s583_s1 + $0x30] sm:$0xff]  ;;  %v43_v17 = vld [vmem:[%s583_s1 + $0x38] sm:$0xff]  ;;  %v373_v18 = vpack.c.bf16 %v133_v13, %v132_v12  ;;  %v134_v19 = vld [vmem:[#allocation2 + $0x20] sm:$0xff] }
  0x18   :  { %348 = vmatprep.subr.bf16.mxu0 %v451_v0  ;;  %v135_v20 = vld [vmem:[#allocation2 + $0x28] sm:$0xff]  ;;  %v355_v21 = vpack.c.bf16 %v43_v17, %v42_v16  ;;  %v44_v22 = vld [vmem:[%s583_s1 + $0x40] sm:$0xff]  ;;  %v136_v25 = vld [vmem:[#allocation2 + $0x30] sm:$0xff] }
  0x19   :  { %371 = vmatpush3.bf16.msra.mxu1 %v370_v15  ;;  %v45_v23 = vld [vmem:[%s583_s1 + $0x48] sm:$0xff]  ;;  %v376_v24 = vpack.c.bf16 %v135_v20, %v134_v19  ;;  %v137_v26 = vld [vmem:[#allocation2 + $0x38] sm:$0xff]  ;;  %v46_v28 = vld [vmem:[%s583_s1 + $0x50] sm:$0xff] }
  0x1a   :  { %372 = vmatprep.subr.bf16.mxu1 %v451_v0  ;;  %v358_v27 = vpack.c.bf16 %v45_v23, %v44_v22  ;;  %v47_v29 = vld [vmem:[%s583_s1 + $0x58] sm:$0xff]  ;;  %v379_v30 = vpack.c.bf16 %v137_v26, %v136_v25  ;;  %v138_v31 = vld [vmem:[#allocation2 + $0x40] sm:$0xff]  ;;  %v139_v32 = vld [vmem:[#allocation2 + $0x48] sm:$0xff] }
  0x1b   :  { %350 = vmatpush3.bf16.msra.mxu0 %v349_v7  ;;  %v361_v33 = vpack.c.bf16 %v47_v29, %v46_v28  ;;  %v48_v34 = vld [vmem:[%s583_s1 + $0x60] sm:$0xff]  ;;  %v49_v35 = vld [vmem:[%s583_s1 + $0x68] sm:$0xff]  ;;  %v382_v36 = vpack.c.bf16 %v139_v32, %v138_v31  ;;  %v140_v37 = vld [vmem:[#allocation2 + $0x50] sm:$0xff] }
  0x1c   :  { %351 = vmatprep.subr.bf16.mxu0 %v451_v0  ;;  %v141_v38 = vld [vmem:[#allocation2 + $0x58] sm:$0xff]  ;;  %v364_v39 = vpack.c.bf16 %v49_v35, %v48_v34  ;;  %v50_v40 = vld [vmem:[%s583_s1 + $0x70] sm:$0xff]  ;;  %v142_v43 = vld [vmem:[#allocation2 + $0x60] sm:$0xff] }
  0x1d   :  { %374 = vmatpush3.bf16.msra.mxu1 %v373_v18  ;;  %v51_v41 = vld [vmem:[%s583_s1 + $0x78] sm:$0xff]  ;;  %v385_v42 = vpack.c.bf16 %v141_v38, %v140_v37  ;;  %v143_v44 = vld [vmem:[#allocation2 + $0x68] sm:$0xff]  ;;  %v35_v47 = vld [vmem:[%s582_s0] sm:$0xff]  ;;  %s454_s0 = smov [#allocation5]  }
  0x1e   :  { %375 = vmatprep.subr.bf16.mxu1 %v451_v0  ;;  %v367_v45 = vpack.c.bf16 %v51_v41, %v50_v40  ;;  %v388_v46 = vpack.c.bf16 %v143_v44, %v142_v43  ;;  %v144_v48 = vld [vmem:[#allocation2 + $0x70] sm:$0xff]  ;;  %v145_v49 = vld [vmem:[#allocation2 + $0x78] sm:$0xff]  ;;  %v239_v51 = vld [vmem:[%s584_s2] ss:$0 sm:$0xff]  ;;  %s230_s17 = sshll.u32 %s454_s0, 4  ;;  %s231_s17 = int_to_ptr.vmem [resolvable:$true] %s230_s17 }
  0x1f   :  { %353 = vmatpush3.bf16.msra.mxu0 %v352_v14  ;;  %v391_v50 = vpack.c.bf16 %v145_v49, %v144_v48  ;;  %v240_v56 = vld [vmem:[%s586_s4] ss:$0 sm:$0xff]  ;;  %s422_s18 = scalar_lea.vmem %s231_s17, 128  ;;  %p427_p9 = scmp.lt.s32.totalorder %s231_s17, %s231_s17 }
  0x20   :  { %354 = vmatprep.subr.bf16.mxu0 %v451_v0  ;;  %p423_p8 = scmp.ne.s32.totalorder %s231_s17, %s422_s18  ;;  %p428_p10 = scmp.lt.s32.totalorder %s422_s18, %s422_s18 }
  0x21   :  { %377 = vmatpush3.bf16.msra.mxu1 %v376_v24 }
  0x22   :  { %378 = vmatprep.subr.bf16.mxu1 %v451_v0  ;;  %p429_p11 = por %p428_p10, %p427_p9 }
  0x23   :  { %356 = vmatpush3.bf16.msra.mxu0 %v355_v21 }
  0x24   :  { %357 = vmatprep.subr.bf16.mxu0 %v451_v0  ;;  %p430_p12 = pnand %p429_p11, %p423_p8 }
  0x25   :  { %380 = vmatpush3.bf16.msra.mxu1 %v379_v30 }
  0x26   :  { %381 = vmatprep.subr.bf16.mxu1 %v451_v0 }
  0x27   :  { %359 = vmatpush3.bf16.msra.mxu0 %v358_v27 }
  0x28   :  { %360 = vmatprep.subr.bf16.mxu0 %v451_v0 }
  0x29   :  { %383 = vmatpush3.bf16.msra.mxu1 %v382_v36 }
  0x2a   :  { %384 = vmatprep.subr.bf16.mxu1 %v451_v0 }
  0x2b   :  { %362 = vmatpush3.bf16.msra.mxu0 %v361_v33 }
  0x2c   :  { %363 = vmatprep.subr.bf16.mxu0 %v451_v0 }
  0x2d   :  { %386 = vmatpush3.bf16.msra.mxu1 %v385_v42 }
  0x2e   :  { %387 = vmatprep.subr.bf16.mxu1 %v451_v0 }
  0x2f   :  { %365 = vmatpush3.bf16.msra.mxu0 %v364_v39 }
  0x30   :  { %366 = vmatprep.subr.bf16.mxu0 %v451_v0 }
  0x31   :  { %389 = vmatpush3.bf16.msra.mxu1 %v388_v46 }
  0x32   :  { %390 = vmatprep.subr.bf16.mxu1 %v451_v0 }
  0x33   :  { %368 = vmatpush3.bf16.msra.mxu0 %v367_v45 }
  0x35   :  { %392 = vmatpush3.bf16.msra.mxu1 %v391_v50 }
  0x36   :  { %308 = vmatmul.mubr.f32.vlgmr.msra.gmra.mrb[0].mxu0 %v35_v47 }
 0x109   :  { %v125_v52 = vpop.f32.mrb[0].mxu0 }
 0x10a   :  { %v126_v53 = vadd.f32 %v239_v51, %v125_v52  ;;  %v309_v54 = vpop.f32.mrb[1].mxu0 }
 0x10c   :  { %v129_v55 = vmax.f32 %v126_v53, 0.0 }
 0x10e   :  { %343 = vmatmul.mubr.f32.vlgmr.msra.gmra.mrb[0].mxu1 %v129_v55 }
 0x1e1   :  { %v219_v57 = vpop.f32.mrb[0].mxu1 }
 0x1e2   :  { %v220_v58 = vadd.f32 %v240_v56, %v219_v57  ;;  %v344_v59 = vpop.f32.mrb[1].mxu1 }
 0x1e4   :  { %223 = vst [vmem:[#allocation5] sm:$0xff] %v220_v58 }
 0x1e5   :  { %433 = shalt.err (!%p430_p12)
}
 0x1e6   :  { %s434_s20 = scalar_lea.hbm %s587_s5, 128 }
 0x1e7   :  { %p435_p13 = scmp.ne.s32.totalorder %s587_s5, %s434_s20  ;;  %p438_p0 = scmp.lt.u32.totalorder %s434_s20, %s587_s5 }
 0x1e9   :  { %p440_p1 = pnand %p438_p0, %p435_p13 }
 0x1eb   :  { %443 = shalt.err (!%p440_p1)
}
 0x1ec   :  { %233 = dma.vmem_to_hbm [thread:$0]  %s231_s17, 128, %s587_s5, [#allocation4]  }
 0x1ed   :  { %446 = dma.done.wait [#allocation4], 128  }
 0x1ee   :  { %447 = vsyncadd [#allocation4], 4294967168 }
 0x1ef   :  { %237 = vsyncpa [#allocation3], 1 }
 0x1f0   :  { %238 = vsyncpa [#allocation4], 1 }

</bundles_post_ra>
